<compile_context>
chip_gen: v7x
topology: tpu7x:2x2x1
jax: 0.10.0
libtpu: 0.0.40
codegen_flags: <defaults>
</compile_context>

<pallas_src>
import math

import jax
import jax.numpy as jnp
from jax.experimental import pallas as pl
from jax.experimental.pallas import tpu as pltpu


def _round_up(x, m):
    return ((x + m - 1) // m) * m


# ----------------------------- Pallas kernel ---------------------------------

def _patch_embed_kernel(x_ref, w_ref, b_ref, o_ref):
    # x_ref: (tm, K2) bf16 patch rows     w_ref: (K2, D2) bf16 (grid-constant)
    # b_ref: (1,  D2) f32  bias           o_ref: (tm, D2) out_dtype
    acc = jnp.dot(x_ref[...], w_ref[...], preferred_element_type=jnp.float32)
    o_ref[...] = (acc + b_ref[...]).astype(o_ref.dtype)


def _choose_row_tile(m2, tm):
    """Row tile: multiple of 16 (bf16 sublane pack); snapped to a multiple of 256
    when large (v6e/v7x MXU rows, also a multiple of 128 for v5e); and small enough
    that the grid has >= 2 steps when the problem allows it (v7x has 2 TCs)."""
    if m2 <= 16:
        return 16
    half = _round_up(pl.cdiv(m2, 2), 16)      # tile <= half rows => >= 2 grid steps
    t = min(tm, half)
    if t >= 256:
        t = (t // 256) * 256
    return t


def _patch_embed_matmul(patches, w2, b2, *, d_out, group, tm=1024,
                        out_dtype=jnp.float32):
    """patches: (M, K) bf16, w2: (K*group, D2) bf16, b2: (1, D2) f32 -> (M, d_out).

    When group > 1, `group` consecutive tokens are packed per stored row via a
    block-diagonal weight so output stores are 128-lane dense (unmasked vst); the
    packed layout is bit-identical to the row-major (M, d_out) result, so the
    trailing reshape is free.  When group == 1 and D2 > d_out, the weight was
    zero-padded to a lane-dense width and the extra columns are sliced off here.
    """
    M, K = patches.shape
    K2, D2 = w2.shape
    assert K2 == K * group and D2 % 128 == 0

    m2 = pl.cdiv(M, group)
    row_tile = _choose_row_tile(m2, tm)
    m2p = _round_up(m2, row_tile)
    Mp = m2p * group

    if Mp != M:
        patches = jnp.pad(patches, ((0, Mp - M), (0, 0)))
    x2 = patches.reshape(m2p, K2)      # free: row-major regrouping of `group` rows

    out_bytes = jnp.dtype(out_dtype).itemsize
    cost = pl.CostEstimate(
        flops=2 * M * K * d_out,       # useful flops only (no block-diagonal zeros)
        bytes_accessed=(x2.size * 2 + w2.size * 2 + b2.size * 4
                        + m2p * D2 * out_bytes),
        transcendentals=0,
    )

    # VMEM actually needed: double-buffered input/output blocks + resident (double
    # buffered) weight and bias, with 2x headroom for compiler scratch; capped at
    # 48 MiB so it also fits v7x (64 MiB/TC).  v5e/v6e (128 MiB) are unaffected.
    vmem_need = (2 * row_tile * K2 * 2 + 2 * row_tile * D2 * out_bytes
                 + 2 * K2 * D2 * 2 + 2 * D2 * 4)
    vmem_limit = min(48 * 1024 * 1024, max(4 * 1024 * 1024, 2 * vmem_need))

    out = pl.pallas_call(
        _patch_embed_kernel,
        out_shape=jax.ShapeDtypeStruct((m2p, D2), out_dtype),
        grid_spec=pltpu.PrefetchScalarGridSpec(
            num_scalar_prefetch=0,
            grid=(m2p // row_tile,),
            in_specs=[
                pl.BlockSpec((row_tile, K2), lambda i: (i, 0)),
                # weight/bias blocks are grid-constant, so Pallas keeps them resident
                # and does not re-DMA them per step (default buffering accepted).
                pl.BlockSpec((K2, D2), lambda i: (0, 0)),
                pl.BlockSpec((1, D2), lambda i: (0, 0)),
            ],
            out_specs=pl.BlockSpec((row_tile, D2), lambda i: (i, 0)),
        ),
        compiler_params=pltpu.CompilerParams(
            dimension_semantics=("parallel",),
            vmem_limit_bytes=vmem_limit,
            # Let XLA fuse the (bf16 cast + patch transpose) producer directly into
            # the Pallas input DMA so the patch matrix is not round-tripped via HBM.
            allow_input_fusion=[True, False, False],
        ),
        cost_estimate=cost,
    )(x2, w2, b2)

    out = out.reshape(Mp, D2 // group)[:M]
    if group == 1 and D2 != d_out:
        out = out[:, :d_out]
    return out


def _pack_params(w_mat, bias, compute_dtype):
    """Pack/pad the (K, D) weight so the kernel output width is lane-dense (128*n).

    D < 128 dividing 128   -> block-diagonal pack of G = 128 // D tokens per row.
    D not a multiple of 128 -> zero-pad columns up to the next multiple of 128.
    """
    K, D = w_mat.shape
    if D < 128 and 128 % D == 0:
        G = 128 // D
        w2 = jnp.kron(jnp.eye(G, dtype=w_mat.dtype), w_mat)     # (G*K, 128)
        b2 = jnp.tile(bias, G).reshape(1, G * D)
    else:
        G = 1
        D2 = _round_up(D, 128)
        w2 = jnp.pad(w_mat, ((0, 0), (0, D2 - D)))
        b2 = jnp.pad(bias, (0, D2 - D)).reshape(1, D2)
    return G, w2.astype(compute_dtype), b2.astype(jnp.float32)


# ----------------------------- Module wrapper --------------------------------

class ObsEmbeddingPallas:
    def __init__(self, c_in, d_model, t_patch_size, patch_size, key,
                 compute_dtype=jnp.bfloat16, out_dtype=jnp.float32, row_tile=1024):
        self.c_in = c_in
        self.d_model = d_model
        self.tp = t_patch_size
        self.p = patch_size
        self.compute_dtype = compute_dtype
        self.out_dtype = out_dtype
        self.row_tile = row_tile

        kw, kb = jax.random.split(key)
        fan_in = c_in * t_patch_size * patch_size * patch_size
        # kaiming_normal_(mode='fan_in', nonlinearity='leaky_relu', a=0) -> gain=sqrt(2)
        gain = math.sqrt(2.0)
        std = gain / math.sqrt(fan_in)
        # Conv3d weight: (d_model, c_in, tP, p, p)
        self.weight = std * jax.random.normal(
            kw, (d_model, c_in, t_patch_size, patch_size, patch_size), jnp.float32)
        # Conv3d default bias init: U(-1/sqrt(fan_in), 1/sqrt(fan_in))
        bound = 1.0 / math.sqrt(fan_in)
        self.bias = jax.random.uniform(
            kb, (d_model,), jnp.float32, minval=-bound, maxval=bound)

        # Precompute the packed / lane-padded weight & bias ONCE per weight value
        # (flattened with (C, kt, kh, kw) order to match the patch feature order).
        K = fan_in
        w_mat = self.weight.reshape(d_model, K).T          # (K, D)
        self.group, self.w_packed, self.b_packed = _pack_params(
            w_mat, self.bias, compute_dtype)

    def __call__(self, x):
        # x: (N, C_in, T, H, W), with T % tp == 0, H % p == 0, W % p == 0
        N, C, T, H, W = x.shape
        tp, p, D = self.tp, self.p, self.d_model
        assert C == self.c_in and T % tp == 0 and H % p == 0 and W % p == 0
        Tn, Hn, Wn = T // tp, H // p, W // p
        K = C * tp * p * p

        # Cast to the compute dtype *before* the layout pass so any materialized
        # intermediate is half-width (and the fused input DMA carries bf16).
        xc = x.astype(self.compute_dtype)

        # --- glue: extract non-overlapping patches (pure layout work) ---
        xp = xc.reshape(N, C, Tn, tp, Hn, p, Wn, p)
        # -> (N, Tn, Hn, Wn, C, tp, p, p): token-major, (C, kt, kh, kw) matches weight
        xp = jnp.transpose(xp, (0, 2, 4, 6, 1, 3, 5, 7))
        patches = xp.reshape(N * Tn * Hn * Wn, K)
        # TODO(synk): for full control of the fusion, re-grid over (N, Tn, Hn) with a
        # raw (C, tp, p, W) input BlockSpec and do this relayout in VMEM (XLU idle);
        # for now allow_input_fusion lets XLA fold cast+transpose into the input DMA.

        # --- hot path: Pallas matmul + bias (bf16 inputs, f32 accumulate) ---
        out = _patch_embed_matmul(
            patches, self.w_packed, self.b_packed,
            d_out=D, group=self.group, tm=self.row_tile, out_dtype=self.out_dtype)

        # matches: conv -> flatten(3) -> einsum('ncts->ntsc') -> reshape(N, -1, D)
        return out.reshape(N, Tn * Hn * Wn, D)


# ----------------------------- Reference (pure JAX) ---------------------------

def _reference(x, weight, bias, tp, p):
    y = jax.lax.conv_general_dilated(
        x, weight, window_strides=(tp, p, p), padding="VALID",
        dimension_numbers=("NCDHW", "OIDHW", "NCDHW"))
    y = y + bias.reshape(1, -1, 1, 1, 1)
    N, D, Tn, Hn, Wn = y.shape
    y = y.reshape(N, D, Tn, Hn * Wn)              # flatten(3)
    y = jnp.transpose(y, (0, 2, 3, 1))            # ncts -> ntsc
    return y.reshape(N, Tn * Hn * Wn, D)


# ----------------------------------- main -------------------------------------

if __name__ == "__main__":
    key = jax.random.PRNGKey(0)
    k_param, k_x = jax.random.split(key)

    c_in, d_model = 4, 32
    t_patch_size, patch_size = 2, 4
    N, T, H, W = 2, 4, 16, 16     # small shapes consistent with the module

    model = ObsEmbeddingPallas(c_in, d_model, t_patch_size, patch_size, k_param)
    x = jax.random.normal(k_x, (N, c_in, T, H, W), jnp.float32)

    fwd = jax.jit(model.__call__)
    out = jax.block_until_ready(fwd(x))

    ref = _reference(x, model.weight, model.bias, t_patch_size, patch_size)
    L = (T // t_patch_size) * (H // patch_size) * (W // patch_size)
    assert out.shape == ref.shape == (N, L, d_model), (out.shape, ref.shape)
    # bf16 inputs with f32 accumulation: expected rel err ~2e-3 at K=128; a packing
    # or layout regression would be orders of magnitude larger.
    rel = jnp.linalg.norm(out - ref) / (jnp.linalg.norm(ref) + 1e-8)
    assert rel < 5e-3, f"relative error too large: {rel}"
    assert jnp.max(jnp.abs(out - ref)) < 0.06

    print("KERNEL_OK")
</pallas_src>

<mosaic_0001>
module attributes {stable_mosaic.version = 11 : i64} {
  func.func @_patch_embed_kernel(%arg0: i32, %arg1: memref<16x512xbf16, #tpu.memory_space<vmem>>, %arg2: memref<512x128xbf16, #tpu.memory_space<vmem>>, %arg3: memref<1x128xf32, #tpu.memory_space<vmem>>, %arg4: memref<16x128xf32, #tpu.memory_space<vmem>>) attributes {dimension_semantics = [#tpu.dimension_semantics<parallel>], iteration_bounds = array<i64: 1>, scalar_prefetch = 0 : i64, scratch_operands = 0 : i64, tpu.core_type = #tpu.core_type<tc>, window_params = [{transform_indices = @transform_0, window_bounds = array<i64: 16, 512>}, {pipeline_mode = #tpu.pipeline_mode<synchronous>, transform_indices = @transform_1, window_bounds = array<i64: 512, 128>}, {pipeline_mode = #tpu.pipeline_mode<synchronous>, transform_indices = @transform_2, window_bounds = array<i64: 1, 128>}, {transform_indices = @transform_3, window_bounds = array<i64: 16, 128>}]} {
    %c0 = arith.constant 0 : index
    %c0_0 = arith.constant 0 : index
    %0 = vector.load %arg1[%c0, %c0_0] : memref<16x512xbf16, #tpu.memory_space<vmem>>, vector<16x512xbf16>
    %c0_1 = arith.constant 0 : index
    %c0_2 = arith.constant 0 : index
    %1 = vector.load %arg2[%c0_1, %c0_2] : memref<512x128xbf16, #tpu.memory_space<vmem>>, vector<512x128xbf16>
    %cst = arith.constant dense<0.000000e+00> : vector<16x128xf32>
    %2 = tpu.matmul %0, %1, %cst {dimension_numbers = #tpu.dot_dimension_numbers<[1], [0], [0], [1], [0, 0, 1, 1], [], []>} : vector<16x512xbf16>, vector<512x128xbf16>, vector<16x128xf32> -> vector<16x128xf32>
    %c0_3 = arith.constant 0 : index
    %c0_4 = arith.constant 0 : index
    %3 = vector.load %arg3[%c0_3, %c0_4] : memref<1x128xf32, #tpu.memory_space<vmem>>, vector<1x128xf32>
    %4 = vector.broadcast %3 : vector<1x128xf32> to vector<16x128xf32>
    %5 = arith.addf %2, %4 : vector<16x128xf32>
    %c0_5 = arith.constant 0 : index
    %c0_6 = arith.constant 0 : index
    %6 = vector.load %arg4[%c0_5, %c0_6] : memref<16x128xf32, #tpu.memory_space<vmem>>, vector<16x128xf32>
    tpu.vector_store %arg4[%c0_5, %c0_6], %5 {strides = array<i32>} : memref<16x128xf32, #tpu.memory_space<vmem>>, vector<16x128xf32>,
    return
  }
  func.func @transform_0(%arg0: i32) -> (i32, i32) {
    %c0_i32 = arith.constant 0 : i32
    %c0_i32_0 = arith.constant 0 : i32
    return %arg0, %c0_i32 : i32, i32
  }
  func.func @transform_1(%arg0: i32) -> (i32, i32) {
    %c0_i32 = arith.constant 0 : i32
    %c0_i32_0 = arith.constant 0 : i32
    %c0_i32_1 = arith.constant 0 : i32
    return %c0_i32, %c0_i32_0 : i32, i32
  }
  func.func @transform_2(%arg0: i32) -> (i32, i32) {
    %c0_i32 = arith.constant 0 : i32
    %c0_i32_0 = arith.constant 0 : i32
    %c0_i32_1 = arith.constant 0 : i32
    return %c0_i32, %c0_i32_0 : i32, i32
  }
  func.func @transform_3(%arg0: i32) -> (i32, i32) {
    %c0_i32 = arith.constant 0 : i32
    %c0_i32_0 = arith.constant 0 : i32
    return %arg0, %c0_i32 : i32, i32
  }
}

</mosaic_0001>

<bundles_post_ra>
// kernel: a_call__.1
= control target key start
LH: loop header
LB: loop body
LE: loop exit
PB: predicated region body
PF: predicated region fallthrough
CT: control target
= control target key end

     0   :  { %s646_s1 = inlined_call_operand.vmem [shape: bf16[512,128], index: 1, kind: input, shape index: {}]   ;;  %s647_s0 = inlined_call_operand.vmem [shape: bf16[16,512], index: 0, kind: input, shape index: {}]   ;;  %s648_s2 = inlined_call_operand.vmem [shape: f32[1,128], index: 2, kind: input, shape index: {}]   ;;  %s649_s3 = inlined_call_operand.vmem [shape: f32[16,128], index: 3, kind: output, shape index: {}]  }
   0x1   :  { %v471_v0 = vld [vmem:[%s646_s1 + $0x40] sm:$0xff]   ;;  %v475_v4 = vld [vmem:[%s646_s1 + $0x48] sm:$0xff]   ;;  %v479_v8 = vld [vmem:[%s646_s1 + $0x50] sm:$0xff]  }
   0x2   :  { %v472_v1 = vld [vmem:[%s646_s1 + $0xc0] sm:$0xff]   ;;  %427 = vmatprep.subr.bf16.mxu0 %v471_v0  ;;  %v476_v5 = vld [vmem:[%s646_s1 + $0xc8] sm:$0xff]   ;;  %v480_v9 = vld [vmem:[%s646_s1 + $0xd0] sm:$0xff]  }
   0x3   :  { %v473_v2 = vld [vmem:[%s646_s1] sm:$0xff]   ;;  %449 = vmatprep.subr.bf16.mxu1 %v472_v1  ;;  %v477_v6 = vld [vmem:[%s646_s1 + $0x8] sm:$0xff]   ;;  %v481_v10 = vld [vmem:[%s646_s1 + $0x10] sm:$0xff]  }
   0x4   :  { %v474_v3 = vld [vmem:[%s646_s1 + $0x80] sm:$0xff]   ;;  %428 = vmatpush3.bf16.msra.mxu0 %v473_v2  ;;  %v478_v7 = vld [vmem:[%s646_s1 + $0x88] sm:$0xff]   ;;  %v482_v11 = vld [vmem:[%s646_s1 + $0x90] sm:$0xff]  }
   0x5   :  { %450 = vmatpush3.bf16.msra.mxu1 %v474_v3  ;;  %429 = vmatprep.subr.bf16.mxu0 %v475_v4  ;;  %v483_v12 = vld [vmem:[%s646_s1 + $0x58] sm:$0xff]   ;;  %v487_v16 = vld [vmem:[%s646_s1 + $0x60] sm:$0xff]   ;;  %v491_v20 = vld [vmem:[%s646_s1 + $0x68] sm:$0xff]  }
   0x6   :  { %451 = vmatprep.subr.bf16.mxu1 %v476_v5  ;;  %v484_v13 = vld [vmem:[%s646_s1 + $0xd8] sm:$0xff]   ;;  %v488_v17 = vld [vmem:[%s646_s1 + $0xe0] sm:$0xff]   ;;  %v492_v21 = vld [vmem:[%s646_s1 + $0xe8] sm:$0xff]  }
   0x7   :  { %v485_v14 = vld [vmem:[%s646_s1 + $0x18] sm:$0xff]   ;;  %v489_v18 = vld [vmem:[%s646_s1 + $0x20] sm:$0xff]   ;;  %v493_v22 = vld [vmem:[%s646_s1 + $0x28] sm:$0xff]  }
   0x8   :  { %430 = vmatpush3.bf16.msra.mxu0 %v477_v6  ;;  %v486_v15 = vld [vmem:[%s646_s1 + $0x98] sm:$0xff]   ;;  %v490_v19 = vld [vmem:[%s646_s1 + $0xa0] sm:$0xff]   ;;  %v494_v23 = vld [vmem:[%s646_s1 + $0xa8] sm:$0xff]  }
   0x9   :  { %452 = vmatpush3.bf16.msra.mxu1 %v478_v7  ;;  %431 = vmatprep.subr.bf16.mxu0 %v479_v8  ;;  %v495_v24 = vld [vmem:[%s646_s1 + $0x70] sm:$0xff]   ;;  %v499_v28 = vld [vmem:[%s646_s1 + $0x78] sm:$0xff]   ;;  %v390_v38 = vld [vmem:[%s648_s2] ss:$0 sm:$0xff] }
   0xa   :  { %453 = vmatprep.subr.bf16.mxu1 %v480_v9  ;;  %v496_v25 = vld [vmem:[%s646_s1 + $0xf0] sm:$0xff]   ;;  %v500_v29 = vld [vmem:[%s646_s1 + $0xf8] sm:$0xff]  }
   0xb   :  { %v497_v26 = vld [vmem:[%s646_s1 + $0x30] sm:$0xff]   ;;  %v501_v30 = vld [vmem:[%s646_s1 + $0x38] sm:$0xff]  }
   0xc   :  { %432 = vmatpush3.bf16.msra.mxu0 %v481_v10  ;;  %v498_v27 = vld [vmem:[%s646_s1 + $0xb0] sm:$0xff]   ;;  %v502_v31 = vld [vmem:[%s646_s1 + $0xb8] sm:$0xff]  }
   0xd   :  { %454 = vmatpush3.bf16.msra.mxu1 %v482_v11  ;;  %433 = vmatprep.subr.bf16.mxu0 %v483_v12  ;;  %v503_v32 = vld [vmem:[%s647_s0] ss:$16 sps:$4 sm:$0xff]   ;;  %v505_v33 = vld [vmem:[%s647_s0 + $0x4] ss:$16 sps:$4 sm:$0xff]   ;;  %v506_v34 = vld [vmem:[%s647_s0 + $0x8] ss:$16 sps:$4 sm:$0xff]  }
   0xe   :  { %455 = vmatprep.subr.bf16.mxu1 %v484_v13  ;;  %v508_v35 = vld [vmem:[%s647_s0 + $0xc] ss:$16 sps:$4 sm:$0xff]   ;;  %334 = vmatprep.mubr.bf16.mxu0 %v505_v33 }
   0xf   :  { %375 = vmatprep.mubr.bf16.mxu1 %v508_v35 }
  0x10   :  { %434 = vmatpush3.bf16.msra.mxu0 %v485_v14 }
  0x11   :  { %456 = vmatpush3.bf16.msra.mxu1 %v486_v15  ;;  %435 = vmatprep.subr.bf16.mxu0 %v487_v16 }
  0x12   :  { %457 = vmatprep.subr.bf16.mxu1 %v488_v17 }
  0x14   :  { %436 = vmatpush3.bf16.msra.mxu0 %v489_v18 }
  0x15   :  { %458 = vmatpush3.bf16.msra.mxu1 %v490_v19  ;;  %437 = vmatprep.subr.bf16.mxu0 %v491_v20 }
  0x16   :  { %459 = vmatprep.subr.bf16.mxu1 %v492_v21 }
  0x18   :  { %438 = vmatpush3.bf16.msra.mxu0 %v493_v22 }
  0x19   :  { %460 = vmatpush3.bf16.msra.mxu1 %v494_v23  ;;  %439 = vmatprep.subr.bf16.mxu0 %v495_v24 }
  0x1a   :  { %461 = vmatprep.subr.bf16.mxu1 %v496_v25 }
  0x1c   :  { %440 = vmatpush3.bf16.msra.mxu0 %v497_v26 }
  0x1d   :  { %462 = vmatpush3.bf16.msra.mxu1 %v498_v27  ;;  %441 = vmatprep.subr.bf16.mxu0 %v499_v28 }
  0x1e   :  { %463 = vmatprep.subr.bf16.mxu1 %v500_v29 }
  0x20   :  { %442 = vmatpush3.bf16.msra.mxu0 %v501_v30 }
  0x21   :  { %464 = vmatpush3.bf16.msra.mxu1 %v502_v31 }
  0x23   :  { %335 = vmatmul.mubr.bf16.vlgmr.msra.gmra.mrb[0].mxu0 %v503_v32 }
  0x24   :  { %376 = vmatmul.mubr.bf16.vlgmr.msra.gmra.mrb[0].mxu1 %v506_v34 }
  0xf6   :  { %v443_v36 = vpop.f32.mrb[0].mxu0 }
  0xf7   :  { %v465_v37 = vpop.f32.mrb[0].mxu1  ;;  %v444_v39 = vpop.f32.mrb[1].mxu0 }
  0xf8   :  { %v445_v40 = vadd.f32 %v444_v39, %v443_v36  ;;  %v466_v41 = vpop.f32.mrb[1].mxu1  ;;  %v446_v42 = vpop.f32.mrb[2].mxu0 }
  0xf9   :  { %v467_v43 = vadd.f32 %v466_v41, %v465_v37  ;;  %v468_v44 = vpop.f32.mrb[2].mxu1  ;;  %v447_v45 = vpop.f32.mrb[3].mxu0 }
  0xfa   :  { %v337_v46 = vadd.f32 %v445_v40, %v390_v38  ;;  %v448_v47 = vadd.f32 %v447_v45, %v446_v42  ;;  %v469_v48 = vpop.f32.mrb[3].mxu1 }
  0xfb   :  { %v470_v49 = vadd.f32 %v469_v48, %v468_v44 }
  0xfc   :  { %v378_v50 = vadd.f32 %v467_v43, %v337_v46  ;;  %v340_v51 = vadd.f32 %v448_v47, %v390_v38 }
  0xfe   :  { %384 = vst [vmem:[%s649_s3] sm:$0xff] %v378_v50  ;;  %v381_v52 = vadd.f32 %v470_v49, %v340_v51 }
 0x100   :  { %385 = vst [vmem:[%s649_s3 + $0x8] sm:$0xff] %v381_v52 }

</bundles_post_ra>
